<compile_context>
chip_gen: v7x
topology: tpu7x:2x2x1
jax: 0.10.0
libtpu: 0.0.40
codegen_flags: <defaults>
</compile_context>

<pallas_src>
import functools

import jax
import jax.numpy as jnp
from jax import lax
from jax.experimental import pallas as pl
from jax.experimental.pallas import tpu as pltpu

LANE = 128
TARGET_BLOCK_BYTES = 2 * 1024 * 1024   # per input stream, per pipeline buffer
VMEM_LIMIT_BYTES = 32 * 1024 * 1024    # raises v5e's 16 MiB default; fits v6e/v7x


def _ceil_div(a, b):
    return -(-a // b)


def _make_kernel(*, eps2, block_rows, bpc, total_blocks, tail_valid, acc_rows,
                 need_mask):
    """Builds the streaming-reduction kernel with static config baked in."""
    last = total_blocks - 1

    def fold(v):
        # Reduce a (block_rows, LANE) f32 block to the (acc_rows, LANE)
        # accumulator shape using only sublane-group adds (no cross-lane work).
        if acc_rows == 8:
            return v.reshape(block_rows // 8, 8, LANE).sum(axis=0)
        return jnp.sum(v, axis=0, keepdims=True)     # tiny single-block case

    def kernel(x_ref, y_ref, o_ref, acc_ref):
        c = pl.program_id(0)          # parallel chunk (megacore axis on v7x)
        i = pl.program_id(1)          # sequential block within the chunk

        @pl.when(i == 0)
        def _():
            acc_ref[...] = jnp.zeros((acc_rows, LANE), dtype=jnp.float32)

        d = x_ref[...].astype(jnp.float32) - y_ref[...].astype(jnp.float32)
        v = jnp.sqrt(d * d + jnp.float32(eps2))

        if need_mask:
            b = c * bpc + i           # flat block index (small int, no overflow)

            @pl.when(b < last)
            def _():                  # fully valid interior block: fast path
                acc_ref[...] += fold(v)

            @pl.when(b >= last)
            def _():
                # Last real block may contain lane-pad zeros / partial-block
                # garbage; dummy trailing steps (b > last) contribute nothing.
                limit = jnp.where(b == last, tail_valid, 0)
                row = lax.broadcasted_iota(jnp.int32, v.shape, 0)
                col = lax.broadcasted_iota(jnp.int32, v.shape, 1)
                keep = (row * LANE + col) < limit
                acc_ref[...] += fold(jnp.where(keep, v, jnp.float32(0.0)))
        else:
            acc_ref[...] += fold(v)

        @pl.when(i == bpc - 1)
        def _():
            o_ref[...] = acc_ref[...]

    return kernel


@functools.partial(jax.jit, static_argnames=("eps", "max_block_rows"))
def charbonnier_loss_pallas(x, y, *, eps=1e-3, max_block_rows=None):
    """Charbonnier loss: mean(sqrt((x - y)^2 + eps^2)) over all elements."""
    orig_dtype = x.dtype
    n = x.size

    if max_block_rows is None:
        # Size blocks by bytes (~2 MiB per input buffer): 4096 rows for f32,
        # 8192 rows for bf16.  Multiple of 8 for clean sublane tiling.
        itemsize = jnp.dtype(x.dtype).itemsize
        max_block_rows = max(8, (TARGET_BLOCK_BYTES // (LANE * itemsize)) // 8 * 8)

    xf = x.reshape(-1)
    yf = y.reshape(-1)

    rem = n % LANE
    if rem:
        # Pad only to the next lane multiple (<= 127 elements); the pad region
        # is masked out inside the kernel, never a full-block pad.
        # TODO(synk): a fully copy-free path for numel % 128 != 0 would need a
        # manual flat-HBM DMA kernel; any reshape of a misaligned tensor copies
        # the stream once anyway.
        pad = LANE - rem
        xf = jnp.pad(xf, (0, pad))
        yf = jnp.pad(yf, (0, pad))

    rows = xf.size // LANE
    x2d = xf.reshape(rows, LANE)
    y2d = yf.reshape(rows, LANE)

    block_rows = max_block_rows if rows > max_block_rows else rows
    total_blocks = _ceil_div(rows, block_rows)
    num_chunks = 2 if total_blocks >= 2 else 1      # megacore split on v7x
    bpc = _ceil_div(total_blocks, num_chunks)       # blocks per chunk

    block_elems = block_rows * LANE
    tail_valid = n - (total_blocks - 1) * block_elems   # valid elems, last block
    has_dummy = num_chunks * bpc > total_blocks
    need_mask = (tail_valid < block_elems) or has_dummy
    acc_rows = 8 if block_rows % 8 == 0 else 1

    kernel = _make_kernel(
        eps2=float(eps) * float(eps), block_rows=block_rows, bpc=bpc,
        total_blocks=total_blocks, tail_valid=tail_valid, acc_rows=acc_rows,
        need_mask=need_mask)

    def in_index(c, i):
        # Clamp so a possible dummy trailing step re-reads the last real block
        # (its contribution is masked to zero in the kernel).
        return (jnp.minimum(c * bpc + i, total_blocks - 1), 0)

    in_spec = pl.BlockSpec((block_rows, LANE), in_index)
    out_spec = pl.BlockSpec((acc_rows, LANE), lambda c, i: (c, 0))

    partials = pl.pallas_call(
        kernel,
        out_shape=jax.ShapeDtypeStruct((num_chunks * acc_rows, LANE), jnp.float32),
        grid_spec=pltpu.PrefetchScalarGridSpec(
            num_scalar_prefetch=0,
            grid=(num_chunks, bpc),
            in_specs=[in_spec, in_spec],
            out_specs=out_spec,
            scratch_shapes=[pltpu.VMEM((acc_rows, LANE), jnp.float32)],
        ),
        compiler_params=pltpu.CompilerParams(
            dimension_semantics=("parallel", "arbitrary"),
            vmem_limit_bytes=VMEM_LIMIT_BYTES),
    )(x2d, y2d)

    mean = jnp.sum(partials) / jnp.float32(n)
    return mean.astype(orig_dtype)


# ---------------------------------------------------------------------------
# Test
# ---------------------------------------------------------------------------
if __name__ == "__main__":
    key = jax.random.PRNGKey(0)
    k1, k2 = jax.random.split(key)
    eps = 1e-3  # module default

    def ref_loss(a, b):
        d = a.astype(jnp.float32) - b.astype(jnp.float32)
        return jnp.mean(jnp.sqrt(d * d + eps * eps))

    # Primary: small NCHW shape matching the module's typical usage.
    x = jax.random.normal(k1, (2, 4, 16, 16), dtype=jnp.float32)
    y = jax.random.normal(k2, (2, 4, 16, 16), dtype=jnp.float32)
    out = jax.block_until_ready(charbonnier_loss_pallas(x, y, eps=eps))
    assert jnp.allclose(out, ref_loss(x, y), rtol=1e-5, atol=1e-6)

    # Odd element count -> lane pad + in-kernel tail mask (single block).
    xa = jax.random.normal(k1, (3, 5, 33, 17), dtype=jnp.float32)
    ya = jax.random.normal(k2, (3, 5, 33, 17), dtype=jnp.float32)
    out_a = jax.block_until_ready(charbonnier_loss_pallas(xa, ya, eps=eps))
    assert jnp.allclose(out_a, ref_loss(xa, ya), rtol=1e-5, atol=1e-6)

    # Force tiny blocks to exercise the multi-block, two-chunk ("parallel")
    # accumulation path on small data.
    xb = jax.random.normal(k1, (2, 4, 128, 160), dtype=jnp.float32)
    yb = jax.random.normal(k2, (2, 4, 128, 160), dtype=jnp.float32)
    out_b = jax.block_until_ready(
        charbonnier_loss_pallas(xb, yb, eps=eps, max_block_rows=64))
    assert jnp.allclose(out_b, ref_loss(xb, yb), rtol=1e-5, atol=1e-6)

    # Tiny blocks + misaligned size -> partial last block, dummy grid step,
    # clamped index_map, and edge masking all exercised.
    out_c = jax.block_until_ready(
        charbonnier_loss_pallas(xa, ya, eps=eps, max_block_rows=16))
    assert jnp.allclose(out_c, ref_loss(xa, ya), rtol=1e-5, atol=1e-6)

    print("KERNEL_OK")
</pallas_src>

<mosaic_0001>
module attributes {stable_mosaic.version = 11 : i64} {
  func.func @kernel(%arg0: i32, %arg1: i32, %arg2: memref<16x128xf32, #tpu.memory_space<vmem>>, %arg3: memref<16x128xf32, #tpu.memory_space<vmem>>, %arg4: memref<8x128xf32, #tpu.memory_space<vmem>>, %arg5: memref<8x128xf32, #tpu.memory_space<vmem>>) attributes {dimension_semantics = [#tpu.dimension_semantics<parallel>, #tpu.dimension_semantics<arbitrary>], iteration_bounds = array<i64: 1, 1>, scalar_prefetch = 0 : i64, scratch_operands = 1 : i64, tpu.core_type = #tpu.core_type<tc>, window_params = [{transform_indices = @transform_0, window_bounds = array<i64: 16, 128>}, {transform_indices = @transform_1, window_bounds = array<i64: 16, 128>}, {transform_indices = @transform_2, window_bounds = array<i64: 8, 128>}]} {
    %c0_i32 = arith.constant 0 : i32
    %0 = arith.cmpi eq, %arg1, %c0_i32 : i32
    %1 = arith.extui %0 : i1 to i32
    %c0_i32_0 = arith.constant 0 : i32
    %2 = arith.cmpi ne, %1, %c0_i32_0 : i32
    scf.if %2 {
      %cst_11 = arith.constant 0.000000e+00 : f32
      %18 = vector.broadcast %cst_11 : f32 to vector<8x128xf32>
      %c0_12 = arith.constant 0 : index
      %c0_13 = arith.constant 0 : index
      %19 = vector.load %arg5[%c0_12, %c0_13] : memref<8x128xf32, #tpu.memory_space<vmem>>, vector<8x128xf32>
      tpu.vector_store %arg5[%c0_12, %c0_13], %18 {strides = array<i32>} : memref<8x128xf32, #tpu.memory_space<vmem>>, vector<8x128xf32>,
    } else {
    }
    %c0 = arith.constant 0 : index
    %c0_1 = arith.constant 0 : index
    %3 = vector.load %arg2[%c0, %c0_1] : memref<16x128xf32, #tpu.memory_space<vmem>>, vector<16x128xf32>
    %c0_2 = arith.constant 0 : index
    %c0_3 = arith.constant 0 : index
    %4 = vector.load %arg3[%c0_2, %c0_3] : memref<16x128xf32, #tpu.memory_space<vmem>>, vector<16x128xf32>
    %5 = arith.subf %3, %4 : vector<16x128xf32>
    %6 = arith.mulf %5, %5 : vector<16x128xf32>
    %cst = arith.constant 9.99999997E-7 : f32
    %7 = vector.broadcast %cst : f32 to vector<16x128xf32>
    %8 = arith.addf %6, %7 : vector<16x128xf32>
    %9 = math.sqrt %8 : vector<16x128xf32>
    %c0_4 = arith.constant 0 : index
    %c0_5 = arith.constant 0 : index
    %10 = vector.load %arg5[%c0_4, %c0_5] : memref<8x128xf32, #tpu.memory_space<vmem>>, vector<8x128xf32>
    %11 = vector.shape_cast %9 : vector<16x128xf32> to vector<2x8x128xf32>
    %cst_6 = arith.constant dense<0.000000e+00> : vector<8x128xf32>
    %12 = vector.multi_reduction <add>, %11, %cst_6 [0] : vector<2x8x128xf32> to vector<8x128xf32>
    %13 = arith.addf %10, %12 : vector<8x128xf32>
    %c0_7 = arith.constant 0 : index
    %c0_8 = arith.constant 0 : index
    %14 = vector.load %arg5[%c0_7, %c0_8] : memref<8x128xf32, #tpu.memory_space<vmem>>, vector<8x128xf32>
    tpu.vector_store %arg5[%c0_7, %c0_8], %13 {strides = array<i32>} : memref<8x128xf32, #tpu.memory_space<vmem>>, vector<8x128xf32>,
    %c0_i32_9 = arith.constant 0 : i32
    %15 = arith.cmpi eq, %arg1, %c0_i32_9 : i32
    %16 = arith.extui %15 : i1 to i32
    %c0_i32_10 = arith.constant 0 : i32
    %17 = arith.cmpi ne, %16, %c0_i32_10 : i32
    scf.if %17 {
      %c0_11 = arith.constant 0 : index
      %c0_12 = arith.constant 0 : index
      %18 = vector.load %arg5[%c0_11, %c0_12] : memref<8x128xf32, #tpu.memory_space<vmem>>, vector<8x128xf32>
      %c0_13 = arith.constant 0 : index
      %c0_14 = arith.constant 0 : index
      %19 = vector.load %arg4[%c0_13, %c0_14] : memref<8x128xf32, #tpu.memory_space<vmem>>, vector<8x128xf32>
      tpu.vector_store %arg4[%c0_13, %c0_14], %18 {strides = array<i32>} : memref<8x128xf32, #tpu.memory_space<vmem>>, vector<8x128xf32>,
    } else {
    }
    return
  }
  func.func @transform_0(%arg0: i32, %arg1: i32) -> (i32, i32) {
    %c1_i32 = arith.constant 1 : i32
    %0 = arith.muli %arg0, %c1_i32 : i32
    %1 = arith.addi %0, %arg1 : i32
    %c0_i32 = arith.constant 0 : i32
    %2 = arith.minsi %1, %c0_i32 : i32
    %c0_i32_0 = arith.constant 0 : i32
    %c0_i32_1 = arith.constant 0 : i32
    return %2, %c0_i32_0 : i32, i32
  }
  func.func @transform_1(%arg0: i32, %arg1: i32) -> (i32, i32) {
    %c1_i32 = arith.constant 1 : i32
    %0 = arith.muli %arg0, %c1_i32 : i32
    %1 = arith.addi %0, %arg1 : i32
    %c0_i32 = arith.constant 0 : i32
    %2 = arith.minsi %1, %c0_i32 : i32
    %c0_i32_0 = arith.constant 0 : i32
    %c0_i32_1 = arith.constant 0 : i32
    return %2, %c0_i32_0 : i32, i32
  }
  func.func @transform_2(%arg0: i32, %arg1: i32) -> (i32, i32) {
    %c0_i32 = arith.constant 0 : i32
    %c0_i32_0 = arith.constant 0 : i32
    return %arg0, %c0_i32 : i32, i32
  }
}

</mosaic_0001>

<bundles_post_ra>
// kernel: charbonnier_loss_pallas.1
= control target key start
LH: loop header
LB: loop body
LE: loop exit
PB: predicated region body
PF: predicated region fallthrough
CT: control target
= control target key end

     0   :  { %s163_s0 = inlined_call_operand.vmem [shape: f32[16,128], index: 0, kind: input, shape index: {}]   ;;  %s164_s1 = inlined_call_operand.vmem [shape: f32[16,128], index: 1, kind: input, shape index: {}]   ;;  %s165_s2 = inlined_call_operand.vmem [shape: f32[8,128], index: 2, kind: output, shape index: {}]  }
   0x1   :  { %v80_v0 = vld [vmem:[%s163_s0] sm:$0xff]  ;;  %v81_v1 = vld [vmem:[%s163_s0 + $0x8] sm:$0xff] }
   0x2   :  { %v82_v2 = vld [vmem:[%s164_s1] sm:$0xff]  ;;  %v83_v3 = vld [vmem:[%s164_s1 + $0x8] sm:$0xff] }
   0x3   :  { %v84_v4 = vsub.f32 %v80_v0, %v82_v2  ;;  %v85_v5 = vsub.f32 %v81_v1, %v83_v3 }
   0x5   :  { %v86_v6 = vmul.f32 %v84_v4, %v84_v4  ;;  %v87_v7 = vmul.f32 %v85_v5, %v85_v5 }
   0x7   :  { %v88_v8 = vadd.f32 1e-06, %v86_v6  ;;  %v89_v9 = vadd.f32 1e-06, %v87_v7 }
   0x9   :  { %129 = vrsqrt.f32 %v88_v8  ;;  %vm92_vm0 = vcmp.eq.f32.partialorder %v88_v8, inf  ;;  %v95_v11 = vand.u32 2147483648, %v88_v8  ;;  %vm94_vm1 = vcmp.eq.f32.partialorder %v88_v8, 0.0 }
   0xa   :  { %131 = vrsqrt.f32 %v89_v9  ;;  %vm99_vm2 = vcmp.eq.f32.partialorder %v89_v9, inf  ;;  %v102_v14 = vand.u32 2147483648, %v89_v9  ;;  %vm101_vm3 = vcmp.eq.f32.partialorder %v89_v9, 0.0 }
  0x13   :  { %v130_v10 = vpop.eup %129 }
  0x14   :  { %v132_v12 = vpop.eup %131  ;;  %v91_v13 = vmul.f32 %v130_v10, %v88_v8 }
  0x15   :  { %v98_v15 = vmul.f32 %v132_v12, %v89_v9 }
  0x16   :  { %v93_v16 = vsel %vm92_vm0, %v88_v8, %v91_v13 }
  0x17   :  { %v96_v17 = vsel %vm94_vm1, %v95_v11, %v93_v16  ;;  %v100_v18 = vsel %vm99_vm2, %v89_v9, %v98_v15 }
  0x18   :  { %v103_v19 = vsel %vm101_vm3, %v102_v14, %v100_v18 }
  0x19   :  { %v105_v20 = vadd.f32 %v103_v19, %v96_v17 }
  0x1b   :  { %112 = vst [vmem:[%s165_s2] sm:$0xff] %v105_v20 }

</bundles_post_ra>
